<compile_context>
chip_gen: v6e
topology: v6e:2x2x1
jax: 0.10.0
libtpu: 0.0.40
codegen_flags: <defaults>
</compile_context>

<pallas_src>
import jax
import jax.numpy as jnp
from jax.experimental import pallas as pl
from jax.experimental.pallas import tpu as pltpu


def _round_up(x, m):
    return ((x + m - 1) // m) * m


def _dnn_rec_kernel(x_ref, w1_ref, b1_ref, w2_ref, b2_ref, w3_ref, b3_ref,
                    o_ref):
    tb = x_ref.shape[0]

    # Layer 1: cast the f32 x tile to bf16 in-kernel (VPU cast hides under the
    # MXU), (TB, D)bf16 @ (D, 512)bf16 -> f32 accum, + bias, ReLU.
    x_bf = x_ref[...].astype(jnp.bfloat16)
    h1 = jnp.dot(x_bf, w1_ref[...], preferred_element_type=jnp.float32)
    h1 = jnp.maximum(h1 + b1_ref[...], 0.0)

    # Layer 2: (TB, 512)bf16 @ (512, 128)bf16 -> f32 accum, + bias, ReLU.
    h2 = jnp.dot(h1.astype(jnp.bfloat16), w2_ref[...],
                 preferred_element_type=jnp.float32)
    h2 = jnp.maximum(h2 + b2_ref[...], 0.0)

    # Output layer Linear(128, 1): contract (1,128) with (TB,128) over the
    # feature axis -> (1, TB) row, i.e. batch lands on the lane axis so the
    # store below is a full-width (lane-dense) vst.  b3 is an SMEM scalar.
    logit = jnp.einsum('od,bd->ob', w3_ref[...], h2,
                       preferred_element_type=jnp.float32) + b3_ref[0, 0]

    # Sigmoid: exp on the EUP + approximate reciprocal on the EUP.
    sig = pl.reciprocal(1.0 + jnp.exp(-logit), approx=True)
    o_ref[...] = sig.reshape(1, 1, tb)


def dnn_rec_forward(x, params, *, tb=2048):
    """Run DNN_REC_Net forward.  x: (B, input_size) f32 -> (B,) f32."""
    w1, b1, w2, b2, w3, b3 = params
    B, D = x.shape

    # One-off weight casts (bf16 MXU operands); biases / out layer stay f32.
    w1_bf = w1.astype(jnp.bfloat16)
    w2_bf = w2.astype(jnp.bfloat16)
    b1r = b1.reshape(1, -1).astype(jnp.float32)
    b2r = b2.reshape(1, -1).astype(jnp.float32)
    w3r = w3.reshape(1, -1).astype(jnp.float32)   # (1, 128)
    b3r = b3.reshape(1, 1).astype(jnp.float32)    # scalar, lives in SMEM

    # Batch tile: multiple of 8 (sublane); big by default to amortize per-step
    # overhead, capped at ceil(B/2) rounded to 256 so the grid has >=2 steps
    # (v7x megacore) whenever the batch is large enough.
    tb = max(8, _round_up(tb, 8))
    half = _round_up((B + 1) // 2, 256)
    TB = max(8, min(tb, half, _round_up(B, 8)))

    B_pad = _round_up(B, TB)
    x_p = x.astype(jnp.float32)
    if B_pad != B:
        x_p = jnp.pad(x_p, ((0, B_pad - B), (0, 0)))
    G = B_pad // TB

    # Constant index_map -> same block every step -> weight stays VMEM-resident.
    def resident(shape):
        return pl.BlockSpec(shape, lambda i: (0,) * len(shape))

    flops = 2 * B_pad * (D * 512 + 512 * 128 + 128)
    bytes_accessed = (B_pad * D * 4                     # x (f32)
                      + (D * 512 + 512 * 128) * 2       # bf16 weights
                      + (512 + 128 + 128 + 1) * 4       # biases + out weights
                      + B_pad * 4)                      # output

    out = pl.pallas_call(
        _dnn_rec_kernel,
        out_shape=jax.ShapeDtypeStruct((G, 1, TB), jnp.float32),
        grid=(G,),
        in_specs=[
            pl.BlockSpec((TB, D), lambda i: (i, 0)),              # x tile
            resident(w1_bf.shape),                                # W1
            resident(b1r.shape),                                  # b1
            resident(w2_bf.shape),                                # W2
            resident(b2r.shape),                                  # b2
            resident(w3r.shape),                                  # w3 row
            pl.BlockSpec(memory_space=pltpu.MemorySpace.SMEM),    # b3 scalar
        ],
        out_specs=pl.BlockSpec((1, 1, TB), lambda i: (i, 0, 0)),  # lane-dense
        compiler_params=pltpu.CompilerParams(
            dimension_semantics=("parallel",),
            vmem_limit_bytes=32 * 1024 * 1024,
        ),
        cost_estimate=pl.CostEstimate(
            flops=flops,
            transcendentals=B_pad,
            bytes_accessed=bytes_accessed,
        ),
    )(x_p, w1_bf, b1r, w2_bf, b2r, w3r, b3r)

    # torch: .squeeze(dim=1) -> (B,); flatten lane-dense tiles, drop padding.
    return out.reshape(-1)[:B]


def init_params(key, input_size):
    """Deterministic init mimicking PyTorch nn.Linear default (uniform +-1/sqrt(fan_in))."""
    def linear(key, fan_in, fan_out):
        kw, kb = jax.random.split(key)
        bound = 1.0 / jnp.sqrt(jnp.float32(fan_in))
        w = jax.random.uniform(kw, (fan_in, fan_out), jnp.float32, -bound, bound)
        b = jax.random.uniform(kb, (fan_out,), jnp.float32, -bound, bound)
        return w, b

    k1, k2, k3 = jax.random.split(key, 3)
    w1, b1 = linear(k1, input_size, 512)
    w2, b2 = linear(k2, 512, 128)
    w3, b3 = linear(k3, 128, 1)
    return (w1, b1, w2, b2, w3, b3)


if __name__ == "__main__":
    key = jax.random.PRNGKey(0)
    kx, kp = jax.random.split(key)

    # Small shapes; batch=200 with tb=128 exercises a 2-step grid plus a
    # ragged (padded) final tile and the lane-dense output path.
    batch = 200
    input_size = 64
    x = jax.random.normal(kx, (batch, input_size), jnp.float32)
    params = init_params(kp, input_size)

    y = dnn_rec_forward(x, params, tb=128)
    jax.block_until_ready(y)

    # Pure-JAX reference mirroring the kernel's bf16-operand / f32-accum math.
    w1, b1, w2, b2, w3, b3 = params
    xb = x.astype(jnp.bfloat16).astype(jnp.float32)
    w1b = w1.astype(jnp.bfloat16).astype(jnp.float32)
    w2b = w2.astype(jnp.bfloat16).astype(jnp.float32)
    h = jnp.maximum(xb @ w1b + b1, 0.0)
    h = jnp.maximum(h.astype(jnp.bfloat16).astype(jnp.float32) @ w2b + b2, 0.0)
    ref = jax.nn.sigmoid((h @ w3 + b3)[:, 0])

    assert y.shape == (batch,), y.shape
    assert jnp.allclose(y, ref, atol=5e-3), (
        float(jnp.max(jnp.abs(y - ref))))

    print("KERNEL_OK")
</pallas_src>

<mosaic_0001>
module attributes {stable_mosaic.version = 11 : i64} {
  func.func @_dnn_rec_kernel(%arg0: i32, %arg1: memref<128x64xf32, #tpu.memory_space<vmem>>, %arg2: memref<64x512xbf16, #tpu.memory_space<vmem>>, %arg3: memref<1x512xf32, #tpu.memory_space<vmem>>, %arg4: memref<512x128xbf16, #tpu.memory_space<vmem>>, %arg5: memref<1x128xf32, #tpu.memory_space<vmem>>, %arg6: memref<1x128xf32, #tpu.memory_space<vmem>>, %arg7: memref<1x1xf32, #tpu.memory_space<smem>>, %arg8: memref<1x1x128xf32, #tpu.memory_space<vmem>>) attributes {dimension_semantics = [#tpu.dimension_semantics<parallel>], iteration_bounds = array<i64: 2>, scalar_prefetch = 0 : i64, scratch_operands = 0 : i64, tpu.core_type = #tpu.core_type<tc>, window_params = [{transform_indices = @transform_0, window_bounds = array<i64: 128, 64>}, {pipeline_mode = #tpu.pipeline_mode<synchronous>, transform_indices = @transform_1, window_bounds = array<i64: 64, 512>}, {pipeline_mode = #tpu.pipeline_mode<synchronous>, transform_indices = @transform_2, window_bounds = array<i64: 1, 512>}, {pipeline_mode = #tpu.pipeline_mode<synchronous>, transform_indices = @transform_3, window_bounds = array<i64: 512, 128>}, {pipeline_mode = #tpu.pipeline_mode<synchronous>, transform_indices = @transform_4, window_bounds = array<i64: 1, 128>}, {pipeline_mode = #tpu.pipeline_mode<synchronous>, transform_indices = @transform_5, window_bounds = array<i64: 1, 128>}, {transform_indices = @transform_6, window_bounds = array<i64: 1, 1>}, {transform_indices = @transform_7, window_bounds = array<i64: 1, 1, 128>}]} {
    %c0 = arith.constant 0 : index
    %c0_0 = arith.constant 0 : index
    %0 = vector.load %arg1[%c0, %c0_0] : memref<128x64xf32, #tpu.memory_space<vmem>>, vector<128x64xf32>
    %1 = arith.truncf %0 : vector<128x64xf32> to vector<128x64xbf16>
    %c0_1 = arith.constant 0 : index
    %c0_2 = arith.constant 0 : index
    %2 = vector.load %arg2[%c0_1, %c0_2] : memref<64x512xbf16, #tpu.memory_space<vmem>>, vector<64x512xbf16>
    %cst = arith.constant dense<0.000000e+00> : vector<128x512xf32>
    %3 = tpu.matmul %1, %2, %cst {dimension_numbers = #tpu.dot_dimension_numbers<[1], [0], [0], [1], [0, 0, 1, 1], [], []>} : vector<128x64xbf16>, vector<64x512xbf16>, vector<128x512xf32> -> vector<128x512xf32>
    %c0_3 = arith.constant 0 : index
    %c0_4 = arith.constant 0 : index
    %4 = vector.load %arg3[%c0_3, %c0_4] : memref<1x512xf32, #tpu.memory_space<vmem>>, vector<1x512xf32>
    %5 = vector.broadcast %4 : vector<1x512xf32> to vector<128x512xf32>
    %6 = arith.addf %3, %5 : vector<128x512xf32>
    %cst_5 = arith.constant 0.000000e+00 : f32
    %7 = vector.broadcast %cst_5 : f32 to vector<128x512xf32>
    %8 = arith.maximumf %6, %7 : vector<128x512xf32>
    %9 = arith.truncf %8 : vector<128x512xf32> to vector<128x512xbf16>
    %c0_6 = arith.constant 0 : index
    %c0_7 = arith.constant 0 : index
    %10 = vector.load %arg4[%c0_6, %c0_7] : memref<512x128xbf16, #tpu.memory_space<vmem>>, vector<512x128xbf16>
    %cst_8 = arith.constant dense<0.000000e+00> : vector<128x128xf32>
    %11 = tpu.matmul %9, %10, %cst_8 {dimension_numbers = #tpu.dot_dimension_numbers<[1], [0], [0], [1], [0, 0, 1, 1], [], []>} : vector<128x512xbf16>, vector<512x128xbf16>, vector<128x128xf32> -> vector<128x128xf32>
    %c0_9 = arith.constant 0 : index
    %c0_10 = arith.constant 0 : index
    %12 = vector.load %arg5[%c0_9, %c0_10] : memref<1x128xf32, #tpu.memory_space<vmem>>, vector<1x128xf32>
    %13 = vector.broadcast %12 : vector<1x128xf32> to vector<128x128xf32>
    %14 = arith.addf %11, %13 : vector<128x128xf32>
    %cst_11 = arith.constant 0.000000e+00 : f32
    %15 = vector.broadcast %cst_11 : f32 to vector<128x128xf32>
    %16 = arith.maximumf %14, %15 : vector<128x128xf32>
    %c0_12 = arith.constant 0 : index
    %c0_13 = arith.constant 0 : index
    %17 = vector.load %arg6[%c0_12, %c0_13] : memref<1x128xf32, #tpu.memory_space<vmem>>, vector<1x128xf32>
    "tpu.trace_start"() <{level = 10 : i32, message = "od,bd->ob"}> : () -> ()
    %cst_14 = arith.constant dense<0.000000e+00> : vector<1x128xf32>
    %18 = tpu.matmul %17, %16, %cst_14 {dimension_numbers = #tpu.dot_dimension_numbers<[1], [1], [0], [0], [0, 0, 1, 0], [], []>} : vector<1x128xf32>, vector<128x128xf32>, vector<1x128xf32> -> vector<1x128xf32>
    "tpu.trace_stop"() : () -> ()
    %c0_15 = arith.constant 0 : index
    %c0_16 = arith.constant 0 : index
    %19 = memref.load %arg7[%c0_15, %c0_16] : memref<1x1xf32, #tpu.memory_space<smem>>
    %20 = vector.broadcast %19 : f32 to vector<1x128xf32>
    %21 = arith.addf %18, %20 : vector<1x128xf32>
    %cst_17 = arith.constant 0.000000e+00 : f32
    %22 = vector.broadcast %cst_17 : f32 to vector<1x128xf32>
    %23 = arith.subf %22, %21 : vector<1x128xf32>
    %24 = math.exp %23 : vector<1x128xf32>
    %cst_18 = arith.constant 1.000000e+00 : f32
    %25 = vector.broadcast %cst_18 : f32 to vector<1x128xf32>
    %26 = arith.addf %25, %24 : vector<1x128xf32>
    %27 = tpu.reciprocal %26 {approx = true} : vector<1x128xf32> -> vector<1x128xf32>
    %28 = vector.shape_cast %27 : vector<1x128xf32> to vector<1x1x128xf32>
    %c0_19 = arith.constant 0 : index
    %c0_20 = arith.constant 0 : index
    %c0_21 = arith.constant 0 : index
    %29 = vector.load %arg8[%c0_19, %c0_20, %c0_21] : memref<1x1x128xf32, #tpu.memory_space<vmem>>, vector<1x1x128xf32>
    tpu.vector_store %arg8[%c0_19, %c0_20, %c0_21], %28 {strides = array<i32>} : memref<1x1x128xf32, #tpu.memory_space<vmem>>, vector<1x1x128xf32>,
    return
  }
  func.func @transform_0(%arg0: i32) -> (i32, i32) {
    %c0_i32 = arith.constant 0 : i32
    %c0_i32_0 = arith.constant 0 : i32
    return %arg0, %c0_i32 : i32, i32
  }
  func.func @transform_1(%arg0: i32) -> (i32, i32) {
    %c0_i32 = arith.constant 0 : i32
    %c0_i32_0 = arith.constant 0 : i32
    %c0_i32_1 = arith.constant 0 : i32
    return %c0_i32, %c0_i32_0 : i32, i32
  }
  func.func @transform_2(%arg0: i32) -> (i32, i32) {
    %c0_i32 = arith.constant 0 : i32
    %c0_i32_0 = arith.constant 0 : i32
    %c0_i32_1 = arith.constant 0 : i32
    return %c0_i32, %c0_i32_0 : i32, i32
  }
  func.func @transform_3(%arg0: i32) -> (i32, i32) {
    %c0_i32 = arith.constant 0 : i32
    %c0_i32_0 = arith.constant 0 : i32
    %c0_i32_1 = arith.constant 0 : i32
    return %c0_i32, %c0_i32_0 : i32, i32
  }
  func.func @transform_4(%arg0: i32) -> (i32, i32) {
    %c0_i32 = arith.constant 0 : i32
    %c0_i32_0 = arith.constant 0 : i32
    %c0_i32_1 = arith.constant 0 : i32
    return %c0_i32, %c0_i32_0 : i32, i32
  }
  func.func @transform_5(%arg0: i32) -> (i32, i32) {
    %c0_i32 = arith.constant 0 : i32
    %c0_i32_0 = arith.constant 0 : i32
    %c0_i32_1 = arith.constant 0 : i32
    return %c0_i32, %c0_i32_0 : i32, i32
  }
  func.func @transform_6(%arg0: i32) -> (i32, i32) {
    %c0_i32 = arith.constant 0 : i32
    %c0_i32_0 = arith.constant 0 : i32
    %c0_i32_1 = arith.constant 0 : i32
    return %c0_i32, %c0_i32_0 : i32, i32
  }
  func.func @transform_7(%arg0: i32) -> (i32, i32, i32) {
    %c0_i32 = arith.constant 0 : i32
    %c0_i32_0 = arith.constant 0 : i32
    %c0_i32_1 = arith.constant 0 : i32
    return %arg0, %c0_i32, %c0_i32_0 : i32, i32, i32
  }
}

</mosaic_0001>

<bundles_post_ra>
// kernel: tpu_custom_call.1
= control target key start
LH: loop header
LB: loop body
LE: loop exit
PB: predicated region body
PF: predicated region fallthrough
CT: control target
= control target key end

     0   :  { %s2298_s0 = inlined_call_operand.vmem [shape: f32[256,64], index: 0, kind: input, shape index: {}]   ;;  %s2299_s1 = inlined_call_operand.vmem [shape: bf16[64,512], index: 1, kind: input, shape index: {}]   ;;  %s2300_s2 = inlined_call_operand.vmem [shape: f32[1,512], index: 2, kind: input, shape index: {}]   ;;  %s2301_s3 = inlined_call_operand.vmem [shape: bf16[512,128], index: 3, kind: input, shape index: {}]   ;;  %s2302_s4 = inlined_call_operand.vmem [shape: f32[1,128], index: 4, kind: input, shape index: {}]   ;;  %s2303_s5 = inlined_call_operand.vmem [shape: f32[1,128], index: 5, kind: input, shape index: {}]   ;;  %s2304_s6 = inlined_call_operand.<no memory space> [shape: f32[1,1], index: 6, kind: input, shape index: {}]   ;;  %s2305_s7 = inlined_call_operand.hbm [shape: f32[2,1,128], index: 7, kind: output, shape index: {}]  }
   0x1   :  { %12 = sst [smem:[#allocation2]] %s2304_s6 }
   0x2   :  { %13 = vsyncpa [#allocation4], 0 }
   0x3   :  { %15 = vsyncpa [#allocation4 + $0x1], 0  ;;  %s1854_s26 = smov 0   ;;  %s1856_s27 = smov 0  }
   0x4   :  { %s1858_s28 = smov 0   ;;  %s1860_s29 = smov 0  }
   0x5 LB: > { %s1388_s6 = sadd.s32 4294967295, %s1805_s29   ;;  %s1389_s30 = sadd.s32 4294967294, %s1805_s29   ;;  %s1805_s29 = sphi %s1860_s29, %s2311_s29   ;;  %s1801_s28 = sphi %s1858_s28, %s2310_s28   ;;  %s1797_s27 = sphi %s1856_s27, %s2309_s27   ;;  %s1793_s26 = sphi %s1854_s26, %s2308_s26  }
   0x6   : > { %s1877_s8 = sadd.s32 1, %s1805_s29   ;;  %s180_s9 = sadd.s32 1, %s1801_s28 }
   0x7   : > { %s177_s10 = ssub.s32 %s1805_s29, %s1877_s8  ;;  %p190_p0 = scmp.ne.s32.totalorder %s1801_s28, %s1797_s27 }
   0x8   : > { %p178_p1 = scmp.eq.s32.totalorder %s177_s10, 0  ;;  %p191_p2 = scmp.eq.s32.totalorder %s1388_s6, 1 }
   0x9   : > { %p196_p3 = scmp.ne.s32.totalorder %s1797_s27, %s1793_s26  ;;  %p197_p4 = scmp.eq.s32.totalorder %s1389_s30, 1 }
   0xa   : > { %s1887_s11 = scalar_select %p178_p1, %s1801_s28, %s180_s9  }
   0xb   : > { %p1889_p5 = por %p191_p2, %p190_p0  ;;  %p1893_p6 = por %p197_p4, %p196_p3 }
   0xc   : > { %p1392_p7 = scmp.ge.s32.totalorder %s1805_s29, 1  ;;  %p242_p8 = scmp.lt.s32.totalorder %s1805_s29, 3 }
   0xe   : > { %p243_p9 = pnand %p1392_p7, %p242_p8 }
   0xf   : > { %s1902_s16 = sshll.u32 (!%p243_p9), %s1388_s6, 4  ;;  %s1243_s22 = sld [smem:[#allocation2]] (!%p243_p9) }
  0x10   : > { %246 = sbr.rel (%p243_p9) target bundleno = 813 (0x32d), region = 48  ;;  %p274_p10 = scmp.lt.s32.totalorder (!%p243_p9), %s1902_s16, 31 }
  0x11   : > { %s2263_s30 = scalar_lea.hbm (!%p243_p9), %s2305_s7, %s1902_s16  ;;  %s1810_s10 = smov (!%p243_p9), [#allocation3]  }
  0x12   : > { %s1749_s14 = sshll.u32 (!%p243_p9), %s1810_s10, 4  ;;  %s1750_s14 = int_to_ptr.vmem [resolvable:$false] %s1749_s14 }
  0x13   : > { %s1751_s15 = scalar_lea.vmem (!%p243_p9), %s1750_s14, 32 }
  0x15   : > { %v1685_v0 = vld [vmem:[%s2299_s1 + $0x64] ss:$16 sps:$4 sm:$0xff]   ;;  %v1687_v1 = vld [vmem:[%s2299_s1 + $0x6c] ss:$16 sps:$4 sm:$0xff]   ;;  %v1807_v2 = vmov 0   ;;  %s275_s25 = scalar_select %p274_p10, %s1902_s16, 31 }
  0x16   : > { %479 = vmatprep.mubr.bf16.mxu0 %v1807_v2  ;;  %592 = vmatprep.mubr.bf16.mxu1 %v1807_v2  ;;  %v1689_v3 = vld [vmem:[%s2299_s1 + $0x60] ss:$16 sps:$4 sm:$0xff]   ;;  %v1690_v4 = vld [vmem:[%s2299_s1 + $0x68] ss:$16 sps:$4 sm:$0xff]   ;;  %v1691_v5 = vld [vmem:[%s2299_s1 + $0x44] ss:$16 sps:$4 sm:$0xff]  }
  0x17   : > { %455 = vmatprep.subr.bf16.mxu0 %v1685_v0  ;;  %568 = vmatprep.subr.bf16.mxu1 %v1687_v1  ;;  %v1693_v6 = vld [vmem:[%s2299_s1 + $0x4c] ss:$16 sps:$4 sm:$0xff]   ;;  %v1695_v7 = vld [vmem:[%s2299_s1 + $0x40] ss:$16 sps:$4 sm:$0xff]   ;;  %v1696_v8 = vld [vmem:[%s2299_s1 + $0x48] ss:$16 sps:$4 sm:$0xff]  }
  0x18   : > { %456 = vmatpush1.bf16.msra.mxu0 %v1689_v3  ;;  %569 = vmatpush1.bf16.msra.mxu1 %v1690_v4  ;;  %v1697_v9 = vld [vmem:[%s2299_s1 + $0x24] ss:$16 sps:$4 sm:$0xff]   ;;  %s1394_s19 = sshll.u32 %s275_s25, 3  ;;  %v1699_v10 = vld [vmem:[%s2299_s1 + $0x2c] ss:$16 sps:$4 sm:$0xff]   ;;  %vm422_vm0 = vcmask 523264  }
  0x19   : > { %457 = vmatprep.subr.bf16.mxu0 %v1691_v5  ;;  %570 = vmatprep.subr.bf16.mxu1 %v1693_v6  ;;  %v1701_v11 = vld [vmem:[%s2299_s1 + $0x20] ss:$16 sps:$4 sm:$0xff]   ;;  %v1702_v12 = vld [vmem:[%s2299_s1 + $0x28] ss:$16 sps:$4 sm:$0xff]   ;;  %v1703_v13 = vld [vmem:[%s2299_s1 + $0x4] ss:$16 sps:$4 sm:$0xff]   ;;  %s1950_s17 = scalar_lea.vmem %s2298_s0, %s1394_s19 }
  0x1a   : > { %v1705_v14 = vld [vmem:[%s2299_s1 + $0xc] ss:$16 sps:$4 sm:$0xff]   ;;  %v1707_v15 = vld [vmem:[%s2299_s1] ss:$16 sps:$4 sm:$0xff]   ;;  %v1708_v16 = vld [vmem:[%s2299_s1 + $0x8] ss:$16 sps:$4 sm:$0xff]  }
  0x1b   : > { %v280_v17 = vld [vmem:[%s1950_s17] sm:$0xff]  ;;  %v281_v18 = vld [vmem:[%s1950_s17 + $0x8] sm:$0xff]  ;;  %v1709_v20 = vld [vmem:[%s2301_s3 + $0x78] sm:$0xff]   ;;  %vm1809_vm1 = vmmov 0   ;;  %s271_s19 = sand.u32 1, %s1797_s27  }
  0x1c   : > { %458 = vmatpush1.bf16.msra.mxu0 %v1695_v7  ;;  %571 = vmatpush1.bf16.msra.mxu1 %v1696_v8  ;;  %v296_v19 = vpack.c.bf16 %v281_v18, %v280_v17  ;;  %v1710_v21 = vld [vmem:[%s2301_s3 + $0x38] sm:$0xff]   ;;  %v282_v22 = vld [vmem:[%s1950_s17 + $0x10] sm:$0xff]  ;;  %v1717_v31 = vld [vmem:[%s2301_s3 + $0x68] sm:$0xff]   ;;  %s272_s23 = scalar_lea.vmem [#allocation3], %s271_s19  ;;  %s1322_s9 = scalar_lea.sflag [#allocation4], %s271_s19 }
  0x1d   : > { %459 = vmatprep.subr.bf16.mxu0 %v1697_v9  ;;  %572 = vmatprep.subr.bf16.mxu1 %v1699_v10  ;;  %v283_v23 = vld [vmem:[%s1950_s17 + $0x18] sm:$0xff]  ;;  %v1713_v26 = vld [vmem:[%s2301_s3 + $0x70] sm:$0xff]   ;;  %v1718_v32 = vld [vmem:[%s2301_s3 + $0x28] sm:$0xff]   ;;  %v322_v9 = vlaneseq }
  0x1e   : > { %v1711_v24 = vld [vmem:[%s2301_s3 + $0xf8] sm:$0xff]   ;;  %v1714_v27 = vld [vmem:[%s2301_s3 + $0x30] sm:$0xff]   ;;  %v297_v29 = vpack.c.bf16 %v283_v23, %v282_v22  ;;  %v284_v33 = vld [vmem:[%s1950_s17 + $0x20] sm:$0xff] }
  0x1f   : > { %v1712_v25 = vld [vmem:[%s2301_s3 + $0xb8] sm:$0xff]   ;;  %v1715_v28 = vld [vmem:[%s2301_s3 + $0xf0] sm:$0xff]   ;;  %v285_v34 = vld [vmem:[%s1950_s17 + $0x28] sm:$0xff]  ;;  %v323_v10 = vshrl.u32 %v322_v9, 7 }
  0x20   : > { %460 = vmatpush1.bf16.msra.mxu0 %v1701_v11  ;;  %573 = vmatpush1.bf16.msra.mxu1 %v1702_v12  ;;  %v1716_v30 = vld [vmem:[%s2301_s3 + $0xb0] sm:$0xff]   ;;  %v1719_v35 = vld [vmem:[%s2301_s3 + $0xe8] sm:$0xff]   ;;  %v1721_v37 = vld [vmem:[%s2301_s3 + $0x60] sm:$0xff]   ;;  %v298_v40 = vpack.c.bf16 %v285_v34, %v284_v33 }
  0x21   : > { %461 = vmatprep.subr.bf16.mxu0 %v1703_v13  ;;  %574 = vmatprep.subr.bf16.mxu1 %v1705_v14  ;;  %v1720_v36 = vld [vmem:[%s2301_s3 + $0xa8] sm:$0xff]   ;;  %v1722_v38 = vld [vmem:[%s2301_s3 + $0x20] sm:$0xff]   ;;  %v1725_v42 = vld [vmem:[%s2301_s3 + $0x58] sm:$0xff]   ;;  %v328_v11 = vsub.s32 1, %v323_v10  ;;  %v336_v12 = vsub.s32 3, %v323_v10  ;;  %v324_v13 = vsub.s32 0, %v323_v10 }
  0x22   : > { %v1723_v39 = vld [vmem:[%s2301_s3 + $0xe0] sm:$0xff]   ;;  %v1726_v43 = vld [vmem:[%s2301_s3 + $0x18] sm:$0xff]   ;;  %v286_v44 = vld [vmem:[%s1950_s17 + $0x30] sm:$0xff]  ;;  %v332_v14 = vsub.s32 2, %v323_v10 }
  0x23   : > { %v1724_v41 = vld [vmem:[%s2301_s3 + $0xa0] sm:$0xff]   ;;  %v287_v45 = vld [vmem:[%s1950_s17 + $0x38] sm:$0xff]  ;;  %v1729_v48 = vld [vmem:[%s2301_s3 + $0x50] sm:$0xff]  }
  0x24   : > { %462 = vmatpush1.bf16.msra.mxu0 %v1707_v15  ;;  %575 = vmatpush1.bf16.msra.mxu1 %v1708_v16  ;;  %v1727_v46 = vld [vmem:[%s2301_s3 + $0xd8] sm:$0xff]   ;;  %v1730_v49 = vld [vmem:[%s2301_s3 + $0x10] sm:$0xff]   ;;  %v299_v51 = vpack.c.bf16 %v287_v45, %v286_v44  ;;  %v1733_v53 = vld [vmem:[%s2301_s3 + $0x48] sm:$0xff]  }
  0x25   : > { %1463 = vmatprep.subr.bf16.mxu0 %v1709_v20  ;;  %1527 = vmatprep.subr.bf16.mxu1 %v1711_v24  ;;  %v1728_v47 = vld [vmem:[%s2301_s3 + $0x98] sm:$0xff]   ;;  %v1731_v50 = vld [vmem:[%s2301_s3 + $0xd0] sm:$0xff]   ;;  %v1734_v54 = vld [vmem:[%s2301_s3 + $0x8] sm:$0xff]  }
  0x26   : > { %v1732_v52 = vld [vmem:[%s2301_s3 + $0x90] sm:$0xff]   ;;  %v288_v55 = vld [vmem:[%s1950_s17 + $0x40] sm:$0xff]  ;;  %v289_v56 = vld [vmem:[%s1950_s17 + $0x48] sm:$0xff] }
  0x27   : > { %1411 = vmatmul.mubr.msk.bf16.vlgmr.msra.gmra.mxu0 %vm422_vm0, %v296_v19  ;;  %1419 = vmatmul.mubr.msk.bf16.vlgmr.msra.gmra.mxu1 %vm422_vm0, %v296_v19  ;;  %v300_v57 = vpack.c.bf16 %v289_v56, %v288_v55  ;;  %v290_v58 = vld [vmem:[%s1950_s17 + $0x50] sm:$0xff]  ;;  %v291_v59 = vld [vmem:[%s1950_s17 + $0x58] sm:$0xff]  ;;  %v292_v61 = vld [vmem:[%s1950_s17 + $0x60] sm:$0xff] }
  0x28   : > { %489 = vmatprep.mubr.bf16.mxu0 %v1807_v2  ;;  %602 = vmatprep.mubr.bf16.mxu1 %v1807_v2  ;;  %v301_v60 = vpack.c.bf16 %v291_v59, %v290_v58  ;;  %v293_v62 = vld [vmem:[%s1950_s17 + $0x68] sm:$0xff]  ;;  %v294_v0 = vld [vmem:[%s1950_s17 + $0x70] sm:$0xff]  ;;  %v295_v1 = vld [vmem:[%s1950_s17 + $0x78] sm:$0xff]  ;;  %s1334_s17 = sshll.u32 %s272_s23, 4  ;;  %s1335_s17 = int_to_ptr.vmem [resolvable:$true] %s1334_s17 }
  0x29   : > { %1464 = vmatpush3.bf16.msra.mxu0 %v1710_v21  ;;  %1528 = vmatpush3.bf16.msra.mxu1 %v1712_v25  ;;  %v302_v63 = vpack.c.bf16 %v293_v62, %v292_v61  ;;  %v303_v3 = vpack.c.bf16 %v295_v1, %v294_v0  ;;  %v1735_v4 = vld [vmem:[%s2301_s3 + $0xc8] sm:$0xff]   ;;  %v1738_v6 = vld [vmem:[%s2301_s3] sm:$0xff]   ;;  %s1745_s25 = scalar_lea.vmem %s1335_s17, 16  ;;  %p1752_p0 = scmp.lt.s32.totalorder %s1335_s17, %s1750_s14 }
  0x2a   : > { %1465 = vmatprep.subr.bf16.mxu0 %v1713_v26  ;;  %1529 = vmatprep.subr.bf16.mxu1 %v1715_v28  ;;  %v1736_v5 = vld [vmem:[%s2301_s3 + $0x88] sm:$0xff]   ;;  %v1739_v7 = vld [vmem:[%s2301_s3 + $0xc0] sm:$0xff]   ;;  %p1746_p11 = scmp.ne.s32.totalorder %s1335_s17, %s1745_s25  ;;  %p1753_p1 = scmp.lt.s32.totalorder %s1751_s15, %s1745_s25 }
  0x2b   : > { %v1740_v8 = vld [vmem:[%s2301_s3 + $0x80] sm:$0xff]  }
  0x2c   : > { %v320_v15 = vld [vmem:[%s2300_s2] sm:$0xf]  ;;  %p1747_p12 = pnand %p1746_p11, %p1889_p5  ;;  %p1754_p2 = por %p1753_p1, %p1752_p0 }
  0x2d   : > { %1466 = vmatpush3.bf16.msra.mxu0 %v1714_v27  ;;  %1530 = vmatpush3.bf16.msra.mxu1 %v1716_v30  ;;  %v2103_v18 = vrot.slane %v320_v15, %v328_v11  ;;  %v2105_v19 = vrot.slane %v320_v15, %v336_v12  ;;  %v2107_v20 = vrot.slane %v320_v15, %v324_v13 }
  0x2e   : > { %1467 = vmatprep.subr.bf16.mxu0 %v1717_v31  ;;  %1531 = vmatprep.subr.bf16.mxu1 %v1719_v35  ;;  %v2109_v21 = vrot.slane %v320_v15, %v332_v14  ;;  %p1748_p13 = pneg %p1747_p12 }
  0x2f   : > { %1412 = vmatmul.mubr.msk.bf16.gmra.mxu0 %vm422_vm0, %v297_v29  ;;  %1420 = vmatmul.mubr.msk.bf16.gmra.mxu1 %vm422_vm0, %v297_v29 }
  0x30   : > { %499 = vmatprep.mubr.bf16.mxu0 %v1807_v2  ;;  %612 = vmatprep.mubr.bf16.mxu1 %v1807_v2  ;;  %p1755_p3 = pnand %p1754_p2, %p1748_p13 }
  0x31   : > { %1468 = vmatpush3.bf16.msra.mxu0 %v1718_v32  ;;  %1532 = vmatpush3.bf16.msra.mxu1 %v1720_v36 }
  0x32   : > { %1469 = vmatprep.subr.bf16.mxu0 %v1721_v37  ;;  %1533 = vmatprep.subr.bf16.mxu1 %v1723_v39 }
  0x35   : > { %1470 = vmatpush3.bf16.msra.mxu0 %v1722_v38  ;;  %1534 = vmatpush3.bf16.msra.mxu1 %v1724_v41 }
  0x36   : > { %1471 = vmatprep.subr.bf16.mxu0 %v1725_v42  ;;  %1535 = vmatprep.subr.bf16.mxu1 %v1727_v46 }
  0x37   : > { %1413 = vmatmul.mubr.msk.bf16.gmra.mxu0 %vm422_vm0, %v298_v40  ;;  %1421 = vmatmul.mubr.msk.bf16.gmra.mxu1 %vm422_vm0, %v298_v40 }
  0x38   : > { %509 = vmatprep.mubr.bf16.mxu0 %v1807_v2  ;;  %622 = vmatprep.mubr.bf16.mxu1 %v1807_v2 }
  0x39   : > { %1472 = vmatpush3.bf16.msra.mxu0 %v1726_v43  ;;  %1536 = vmatpush3.bf16.msra.mxu1 %v1728_v47 }
  0x3a   : > { %1473 = vmatprep.subr.bf16.mxu0 %v1729_v48  ;;  %1537 = vmatprep.subr.bf16.mxu1 %v1731_v50 }
  0x3d   : > { %1474 = vmatpush3.bf16.msra.mxu0 %v1730_v49  ;;  %1538 = vmatpush3.bf16.msra.mxu1 %v1732_v52 }
  0x3e   : > { %1475 = vmatprep.subr.bf16.mxu0 %v1733_v53  ;;  %1539 = vmatprep.subr.bf16.mxu1 %v1735_v4 }
  0x3f   : > { %1414 = vmatmul.mubr.msk.bf16.gmra.mxu0 %vm422_vm0, %v299_v51  ;;  %1422 = vmatmul.mubr.msk.bf16.gmra.mxu1 %vm422_vm0, %v299_v51 }
  0x40   : > { %519 = vmatprep.mubr.bf16.mxu0 %v1807_v2  ;;  %632 = vmatprep.mubr.bf16.mxu1 %v1807_v2 }
  0x41   : > { %1476 = vmatpush3.bf16.msra.mxu0 %v1734_v54  ;;  %1540 = vmatpush3.bf16.msra.mxu1 %v1736_v5 }
  0x42   : > { %1541 = vmatprep.subr.bf16.mxu1 %v1739_v7 }
  0x45   : > { %1542 = vmatpush3.bf16.msra.mxu1 %v1740_v8 }
  0x47   : > { %1415 = vmatmul.mubr.msk.bf16.gmra.mxu0 %vm422_vm0, %v300_v57  ;;  %1423 = vmatmul.mubr.msk.bf16.gmra.mxu1 %vm422_vm0, %v300_v57 }
  0x48   : > { %529 = vmatprep.mubr.bf16.mxu0 %v1807_v2  ;;  %642 = vmatprep.mubr.bf16.mxu1 %v1807_v2 }
  0x4f   : > { %1416 = vmatmul.mubr.msk.bf16.gmra.mxu0 %vm422_vm0, %v301_v60  ;;  %1424 = vmatmul.mubr.msk.bf16.gmra.mxu1 %vm422_vm0, %v301_v60 }
  0x50   : > { %539 = vmatprep.mubr.bf16.mxu0 %v1807_v2  ;;  %652 = vmatprep.mubr.bf16.mxu1 %v1807_v2 }
  0x57   : > { %1417 = vmatmul.mubr.msk.bf16.gmra.mxu0 %vm422_vm0, %v302_v63  ;;  %1425 = vmatmul.mubr.msk.bf16.gmra.mxu1 %vm422_vm0, %v302_v63 }
  0x58   : > { %549 = vmatprep.mubr.bf16.mxu0 %v1807_v2  ;;  %662 = vmatprep.mubr.bf16.mxu1 %v1807_v2  ;;  %v1737_v2 = vld [vmem:[%s2301_s3 + $0x40] sm:$0xff]  }
  0x59   : > { %1477 = vmatprep.subr.bf16.mxu0 %v1737_v2 }
  0x5a   : > { %1478 = vmatpush3.bf16.msra.mxu0 %v1738_v6 }
  0x5f   : > { %1418 = vmatmul.mubr.msk.bf16.gmra.mxu0 %vm422_vm0, %v303_v3  ;;  %1426 = vmatmul.mubr.msk.bf16.gmra.mxu1 %vm422_vm0, %v303_v3 }
  0xe7   : > { %v481_v16 = vpop.f32.mrf.mxu0  ;;  %v594_v17 = vpop.f32.mrf.mxu1 }
  0xe8   : > { %v482_v30 = vadd.f32 %v481_v16, %v2107_v20  ;;  %v595_v31 = vadd.f32 %v594_v17, %v2109_v21 }
  0xe9   : > { %v483_v22 = vpop.f32.mrf.mxu0  ;;  %v596_v23 = vpop.f32.mrf.mxu1 }
  0xea   : > { %v484_v26 = vadd.f32 %v483_v22, %v2103_v18  ;;  %v597_v27 = vadd.f32 %v596_v23, %v2105_v19  ;;  %v673_v44 = vmax.f32 %v482_v30, 0.0  ;;  %v675_v45 = vmax.f32 %v595_v31, 0.0 }
  0xeb   : > { %v485_v24 = vpop.f32.mrf.mxu0  ;;  %v598_v25 = vpop.f32.mrf.mxu1 }
  0xec   : > { %v486_v28 = vadd.f32 %v485_v24, %v2107_v20  ;;  %v599_v29 = vadd.f32 %v598_v25, %v2109_v21  ;;  %v674_v40 = vmax.f32 %v484_v26, 0.0  ;;  %v676_v41 = vmax.f32 %v597_v27, 0.0 }
  0xed   : > { %v487_v32 = vpop.f32.mrf.mxu0  ;;  %v600_v33 = vpop.f32.mrf.mxu1 }
  0xee   : > { %v488_v34 = vadd.f32 %v487_v32, %v2103_v18  ;;  %v601_v35 = vadd.f32 %v600_v33, %v2105_v19  ;;  %v677_v36 = vmax.f32 %v486_v28, 0.0  ;;  %v679_v37 = vmax.f32 %v599_v29, 0.0 }
  0xef   : > { %v491_v38 = vpop.f32.mrf.mxu0  ;;  %v604_v39 = vpop.f32.mrf.mxu1 }
  0xf0   : > { %v678_v42 = vmax.f32 %v488_v34, 0.0  ;;  %v680_v43 = vmax.f32 %v601_v35, 0.0  ;;  %v737_v50 = vpack.c.bf16 %v677_v36, %v673_v44  ;;  %v739_v51 = vpack.c.bf16 %v679_v37, %v675_v45 }
  0xf1   : > { %v493_v46 = vpop.f32.mrf.mxu0  ;;  %v606_v47 = vpop.f32.mrf.mxu1  ;;  %v492_v58 = vadd.f32 %v491_v38, %v2107_v20  ;;  %v605_v59 = vadd.f32 %v604_v39, %v2109_v21 }
  0xf2   : > { %v738_v48 = vpack.c.bf16 %v678_v42, %v674_v40  ;;  %v740_v49 = vpack.c.bf16 %v680_v43, %v676_v41  ;;  %v494_v52 = vadd.f32 %v493_v46, %v2103_v18  ;;  %v607_v55 = vadd.f32 %v606_v47, %v2105_v19 }
  0xf3   : > { %v495_v53 = vpop.f32.mrf.mxu0  ;;  %v608_v54 = vpop.f32.mrf.mxu1  ;;  %v681_v8 = vmax.f32 %v492_v58, 0.0  ;;  %v683_v9 = vmax.f32 %v605_v59, 0.0 }
  0xf4   : > { %v496_v56 = vadd.f32 %v495_v53, %v2107_v20  ;;  %v609_v57 = vadd.f32 %v608_v54, %v2109_v21  ;;  %1064 = vmatprep.mubr.bf16.mxu0 %v738_v48  ;;  %1161 = vmatprep.mubr.bf16.mxu1 %v740_v49  ;;  %v682_v5 = vmax.f32 %v494_v52, 0.0  ;;  %v684_v2 = vmax.f32 %v607_v55, 0.0 }
  0xf5   : > { %v497_v60 = vpop.f32.mrf.mxu0  ;;  %v610_v61 = vpop.f32.mrf.mxu1  ;;  %1065 = vmatmul.mubr.bf16.vlgmr.msra.gmra.mxu0 %v737_v50  ;;  %1162 = vmatmul.mubr.bf16.vlgmr.msra.gmra.mxu1 %v739_v51 }
  0xf6   : > { %v498_v62 = vadd.f32 %v497_v60, %v2103_v18  ;;  %v611_v63 = vadd.f32 %v610_v61, %v2105_v19  ;;  %v685_v0 = vmax.f32 %v496_v56, 0.0  ;;  %v687_v1 = vmax.f32 %v609_v57, 0.0 }
  0xf7   : > { %v501_v3 = vpop.f32.mrf.mxu0  ;;  %v614_v4 = vpop.f32.mrf.mxu1 }
  0xf8   : > { %v686_v6 = vmax.f32 %v498_v62, 0.0  ;;  %v688_v7 = vmax.f32 %v611_v63, 0.0  ;;  %v741_v14 = vpack.c.bf16 %v685_v0, %v681_v8  ;;  %v743_v15 = vpack.c.bf16 %v687_v1, %v683_v9 }
  0xf9   : > { %v503_v10 = vpop.f32.mrf.mxu0  ;;  %v616_v11 = vpop.f32.mrf.mxu1  ;;  %v502_v26 = vadd.f32 %v501_v3, %v2107_v20  ;;  %v615_v27 = vadd.f32 %v614_v4, %v2109_v21 }
  0xfa   : > { %v742_v12 = vpack.c.bf16 %v686_v6, %v682_v5  ;;  %v744_v13 = vpack.c.bf16 %v688_v7, %v684_v2  ;;  %v504_v16 = vadd.f32 %v503_v10, %v2103_v18  ;;  %v617_v23 = vadd.f32 %v616_v11, %v2105_v19 }
  0xfb   : > { %v505_v17 = vpop.f32.mrf.mxu0  ;;  %v618_v22 = vpop.f32.mrf.mxu1  ;;  %v689_v40 = vmax.f32 %v502_v26, 0.0  ;;  %v691_v41 = vmax.f32 %v615_v27, 0.0 }
  0xfc   : > { %v506_v24 = vadd.f32 %v505_v17, %v2107_v20  ;;  %v619_v25 = vadd.f32 %v618_v22, %v2109_v21  ;;  %1072 = vmatprep.mubr.bf16.mxu0 %v742_v12  ;;  %1169 = vmatprep.mubr.bf16.mxu1 %v744_v13  ;;  %v690_v36 = vmax.f32 %v504_v16, 0.0  ;;  %v692_v37 = vmax.f32 %v617_v23, 0.0 }
  0xfd   : > { %v507_v28 = vpop.f32.mrf.mxu0  ;;  %v620_v29 = vpop.f32.mrf.mxu1  ;;  %1073 = vmatmul.mubr.bf16.gmra.mxu0 %v741_v14  ;;  %1170 = vmatmul.mubr.bf16.gmra.mxu1 %v743_v15 }
  0xfe   : > { %v508_v30 = vadd.f32 %v507_v28, %v2103_v18  ;;  %v621_v31 = vadd.f32 %v620_v29, %v2105_v19  ;;  %v693_v32 = vmax.f32 %v506_v24, 0.0  ;;  %v695_v33 = vmax.f32 %v619_v25, 0.0 }
  0xff   : > { %v511_v34 = vpop.f32.mrf.mxu0  ;;  %v624_v35 = vpop.f32.mrf.mxu1 }
 0x100   : > { %v694_v38 = vmax.f32 %v508_v30, 0.0  ;;  %v696_v39 = vmax.f32 %v621_v31, 0.0  ;;  %v745_v46 = vpack.c.bf16 %v693_v32, %v689_v40  ;;  %v747_v47 = vpack.c.bf16 %v695_v33, %v691_v41 }
 0x101   : > { %v513_v42 = vpop.f32.mrf.mxu0  ;;  %v626_v43 = vpop.f32.mrf.mxu1  ;;  %v512_v54 = vadd.f32 %v511_v34, %v2107_v20  ;;  %v625_v55 = vadd.f32 %v624_v35, %v2109_v21 }
 0x102   : > { %v746_v44 = vpack.c.bf16 %v694_v38, %v690_v36  ;;  %v748_v45 = vpack.c.bf16 %v696_v39, %v692_v37  ;;  %v514_v48 = vadd.f32 %v513_v42, %v2103_v18  ;;  %v627_v51 = vadd.f32 %v626_v43, %v2105_v19 }
 0x103   : > { %v515_v49 = vpop.f32.mrf.mxu0  ;;  %v628_v50 = vpop.f32.mrf.mxu1  ;;  %v697_v5 = vmax.f32 %v512_v54, 0.0  ;;  %v699_v2 = vmax.f32 %v625_v55, 0.0 }
 0x104   : > { %v516_v52 = vadd.f32 %v515_v49, %v2107_v20  ;;  %v629_v53 = vadd.f32 %v628_v50, %v2109_v21  ;;  %1080 = vmatprep.mubr.bf16.mxu0 %v746_v44  ;;  %1177 = vmatprep.mubr.bf16.mxu1 %v748_v45  ;;  %v698_v0 = vmax.f32 %v514_v48, 0.0  ;;  %v700_v1 = vmax.f32 %v627_v51, 0.0 }
 0x105   : > { %v517_v56 = vpop.f32.mrf.mxu0  ;;  %v630_v57 = vpop.f32.mrf.mxu1  ;;  %1081 = vmatmul.mubr.bf16.gmra.mxu0 %v745_v46  ;;  %1178 = vmatmul.mubr.bf16.gmra.mxu1 %v747_v47 }
 0x106   : > { %v518_v58 = vadd.f32 %v517_v56, %v2103_v18  ;;  %v631_v59 = vadd.f32 %v630_v57, %v2105_v19  ;;  %v701_v60 = vmax.f32 %v516_v52, 0.0  ;;  %v703_v61 = vmax.f32 %v629_v53, 0.0 }
 0x107   : > { %v521_v62 = vpop.f32.mrf.mxu0  ;;  %v634_v63 = vpop.f32.mrf.mxu1 }
 0x108   : > { %v702_v3 = vmax.f32 %v518_v58, 0.0  ;;  %v704_v4 = vmax.f32 %v631_v59, 0.0  ;;  %v749_v10 = vpack.c.bf16 %v701_v60, %v697_v5  ;;  %v751_v11 = vpack.c.bf16 %v703_v61, %v699_v2 }
 0x109   : > { %v523_v6 = vpop.f32.mrf.mxu0  ;;  %v636_v7 = vpop.f32.mrf.mxu1  ;;  %v522_v22 = vadd.f32 %v521_v62, %v2107_v20  ;;  %v635_v23 = vadd.f32 %v634_v63, %v2109_v21 }
 0x10a   : > { %v750_v8 = vpack.c.bf16 %v702_v3, %v698_v0  ;;  %v752_v9 = vpack.c.bf16 %v704_v4, %v700_v1  ;;  %v524_v12 = vadd.f32 %v523_v6, %v2103_v18  ;;  %v637_v15 = vadd.f32 %v636_v7, %v2105_v19 }
 0x10b   : > { %v525_v13 = vpop.f32.mrf.mxu0  ;;  %v638_v14 = vpop.f32.mrf.mxu1  ;;  %v705_v36 = vmax.f32 %v522_v22, 0.0  ;;  %v707_v37 = vmax.f32 %v635_v23, 0.0 }
 0x10c   : > { %v526_v16 = vadd.f32 %v525_v13, %v2107_v20  ;;  %v639_v17 = vadd.f32 %v638_v14, %v2109_v21  ;;  %1088 = vmatprep.mubr.bf16.mxu0 %v750_v8  ;;  %1185 = vmatprep.mubr.bf16.mxu1 %v752_v9  ;;  %v706_v32 = vmax.f32 %v524_v12, 0.0  ;;  %v708_v33 = vmax.f32 %v637_v15, 0.0 }
 0x10d   : > { %v527_v24 = vpop.f32.mrf.mxu0  ;;  %v640_v25 = vpop.f32.mrf.mxu1  ;;  %1089 = vmatmul.mubr.bf16.gmra.mxu0 %v749_v10  ;;  %1186 = vmatmul.mubr.bf16.gmra.mxu1 %v751_v11 }
 0x10e   : > { %v528_v26 = vadd.f32 %v527_v24, %v2103_v18  ;;  %v641_v27 = vadd.f32 %v640_v25, %v2105_v19  ;;  %v709_v28 = vmax.f32 %v526_v16, 0.0  ;;  %v711_v29 = vmax.f32 %v639_v17, 0.0 }
 0x10f   : > { %v531_v30 = vpop.f32.mrf.mxu0  ;;  %v644_v31 = vpop.f32.mrf.mxu1 }
 0x110   : > { %v710_v34 = vmax.f32 %v528_v26, 0.0  ;;  %v712_v35 = vmax.f32 %v641_v27, 0.0  ;;  %v753_v42 = vpack.c.bf16 %v709_v28, %v705_v36  ;;  %v755_v43 = vpack.c.bf16 %v711_v29, %v707_v37 }
 0x111   : > { %v533_v38 = vpop.f32.mrf.mxu0  ;;  %v646_v39 = vpop.f32.mrf.mxu1  ;;  %v532_v50 = vadd.f32 %v531_v30, %v2107_v20  ;;  %v645_v51 = vadd.f32 %v644_v31, %v2109_v21 }
 0x112   : > { %v754_v40 = vpack.c.bf16 %v710_v34, %v706_v32  ;;  %v756_v41 = vpack.c.bf16 %v712_v35, %v708_v33  ;;  %v534_v44 = vadd.f32 %v533_v38, %v2103_v18  ;;  %v647_v47 = vadd.f32 %v646_v39, %v2105_v19 }
 0x113   : > { %v535_v45 = vpop.f32.mrf.mxu0  ;;  %v648_v46 = vpop.f32.mrf.mxu1  ;;  %v713_v0 = vmax.f32 %v532_v50, 0.0  ;;  %v715_v1 = vmax.f32 %v645_v51, 0.0 }
 0x114   : > { %v536_v48 = vadd.f32 %v535_v45, %v2107_v20  ;;  %v649_v49 = vadd.f32 %v648_v46, %v2109_v21  ;;  %1096 = vmatprep.mubr.bf16.mxu0 %v754_v40  ;;  %1193 = vmatprep.mubr.bf16.mxu1 %v756_v41  ;;  %v714_v60 = vmax.f32 %v534_v44, 0.0  ;;  %v716_v61 = vmax.f32 %v647_v47, 0.0 }
 0x115   : > { %v537_v52 = vpop.f32.mrf.mxu0  ;;  %v650_v53 = vpop.f32.mrf.mxu1  ;;  %1097 = vmatmul.mubr.bf16.gmra.mxu0 %v753_v42  ;;  %1194 = vmatmul.mubr.bf16.gmra.mxu1 %v755_v43 }
 0x116   : > { %v538_v54 = vadd.f32 %v537_v52, %v2103_v18  ;;  %v651_v55 = vadd.f32 %v650_v53, %v2105_v19  ;;  %v717_v56 = vmax.f32 %v536_v48, 0.0  ;;  %v719_v57 = vmax.f32 %v649_v49, 0.0 }
 0x117   : > { %v541_v58 = vpop.f32.mrf.mxu0  ;;  %v654_v59 = vpop.f32.mrf.mxu1 }
 0x118   : > { %v718_v62 = vmax.f32 %v538_v54, 0.0  ;;  %v720_v63 = vmax.f32 %v651_v55, 0.0  ;;  %v757_v6 = vpack.c.bf16 %v717_v56, %v713_v0  ;;  %v759_v7 = vpack.c.bf16 %v719_v57, %v715_v1 }
 0x119   : > { %v543_v3 = vpop.f32.mrf.mxu0  ;;  %v656_v4 = vpop.f32.mrf.mxu1  ;;  %v542_v14 = vadd.f32 %v541_v58, %v2107_v20  ;;  %v655_v15 = vadd.f32 %v654_v59, %v2109_v21 }
 0x11a   : > { %v758_v5 = vpack.c.bf16 %v718_v62, %v714_v60  ;;  %v760_v2 = vpack.c.bf16 %v720_v63, %v716_v61  ;;  %v544_v8 = vadd.f32 %v543_v3, %v2103_v18  ;;  %v657_v11 = vadd.f32 %v656_v4, %v2105_v19  ;;  %v2179_v63 = vld [vmem:[%s2302_s4] ss:$0 sm:$0xff] }
 0x11b   : > { %v545_v9 = vpop.f32.mrf.mxu0  ;;  %v658_v10 = vpop.f32.mrf.mxu1  ;;  %v721_v32 = vmax.f32 %v542_v14, 0.0  ;;  %v723_v33 = vmax.f32 %v655_v15, 0.0  ;;  %v1808_v62 = vmov 0.0  }
 0x11c   : > { %v546_v12 = vadd.f32 %v545_v9, %v2107_v20  ;;  %v659_v13 = vadd.f32 %v658_v10, %v2109_v21  ;;  %1104 = vmatprep.mubr.bf16.mxu0 %v758_v5  ;;  %1201 = vmatprep.mubr.bf16.mxu1 %v760_v2  ;;  %v722_v28 = vmax.f32 %v544_v8, 0.0  ;;  %v724_v29 = vmax.f32 %v657_v11, 0.0 }
 0x11d   : > { %v547_v16 = vpop.f32.mrf.mxu0  ;;  %v660_v17 = vpop.f32.mrf.mxu1  ;;  %1105 = vmatmul.mubr.bf16.gmra.mxu0 %v757_v6  ;;  %1202 = vmatmul.mubr.bf16.gmra.mxu1 %v759_v7 }
 0x11e   : > { %v548_v22 = vadd.f32 %v547_v16, %v2103_v18  ;;  %v661_v23 = vadd.f32 %v660_v17, %v2105_v19  ;;  %v725_v24 = vmax.f32 %v546_v12, 0.0  ;;  %v727_v25 = vmax.f32 %v659_v13, 0.0  ;;  %1608 = vmatprep.subr.mxu0 %v1808_v62 }
 0x11f   : > { %v551_v26 = vpop.f32.mrf.mxu0  ;;  %v664_v27 = vpop.f32.mrf.mxu1 }
 0x120   : > { %v726_v30 = vmax.f32 %v548_v22, 0.0  ;;  %v728_v31 = vmax.f32 %v661_v23, 0.0  ;;  %v761_v38 = vpack.c.bf16 %v725_v24, %v721_v32  ;;  %v763_v39 = vpack.c.bf16 %v727_v25, %v723_v33 }
 0x121   : > { %v553_v34 = vpop.f32.mrf.mxu0  ;;  %v666_v35 = vpop.f32.mrf.mxu1  ;;  %v552_v46 = vadd.f32 %v551_v26, %v2107_v20  ;;  %v665_v47 = vadd.f32 %v664_v27, %v2109_v21 }
 0x122   : > { %v762_v36 = vpack.c.bf16 %v726_v30, %v722_v28  ;;  %v764_v37 = vpack.c.bf16 %v728_v31, %v724_v29  ;;  %v554_v40 = vadd.f32 %v553_v34, %v2103_v18  ;;  %v667_v43 = vadd.f32 %v666_v35, %v2105_v19 }
 0x123   : > { %v555_v41 = vpop.f32.mrf.mxu0  ;;  %v668_v42 = vpop.f32.mrf.mxu1  ;;  %v729_v58 = vmax.f32 %v552_v46, 0.0  ;;  %v731_v59 = vmax.f32 %v665_v47, 0.0 }
 0x124   : > { %v556_v44 = vadd.f32 %v555_v41, %v2107_v20  ;;  %v669_v45 = vadd.f32 %v668_v42, %v2109_v21  ;;  %1112 = vmatprep.mubr.bf16.mxu0 %v762_v36  ;;  %1209 = vmatprep.mubr.bf16.mxu1 %v764_v37  ;;  %v730_v54 = vmax.f32 %v554_v40, 0.0  ;;  %v732_v55 = vmax.f32 %v667_v43, 0.0 }
 0x125   : > { %v557_v48 = vpop.f32.mrf.mxu0  ;;  %v670_v49 = vpop.f32.mrf.mxu1  ;;  %1113 = vmatmul.mubr.bf16.gmra.mxu0 %v761_v38  ;;  %1210 = vmatmul.mubr.bf16.gmra.mxu1 %v763_v39 }
 0x126   : > { %v558_v50 = vadd.f32 %v557_v48, %v2103_v18  ;;  %v671_v51 = vadd.f32 %v670_v49, %v2105_v19  ;;  %v733_v52 = vmax.f32 %v556_v44, 0.0  ;;  %v735_v53 = vmax.f32 %v669_v45, 0.0 }
 0x128   : > { %v734_v56 = vmax.f32 %v558_v50, 0.0  ;;  %v736_v57 = vmax.f32 %v671_v51, 0.0  ;;  %v765_v61 = vpack.c.bf16 %v733_v52, %v729_v58  ;;  %v767_v21 = vpack.c.bf16 %v735_v53, %v731_v59 }
 0x12a   : > { %v766_v60 = vpack.c.bf16 %v734_v56, %v730_v54  ;;  %v768_v20 = vpack.c.bf16 %v736_v57, %v732_v55 }
 0x12c   : > { %1120 = vmatprep.mubr.bf16.mxu0 %v766_v60  ;;  %1217 = vmatprep.mubr.bf16.mxu1 %v768_v20 }
 0x12d   : > { %1121 = vmatmul.mubr.bf16.gmra.mxu0 %v765_v61  ;;  %1218 = vmatmul.mubr.bf16.gmra.mxu1 %v767_v21 }
 0x12e   : > { %1640 = vmatprep.mubr.msk.f32.mxu0 %vm1809_vm1, %v1808_v62 }
 0x1b5   : > { %v1479_v18 = vpop.f32.mrf.mxu0  ;;  %v1543_v19 = vpop.f32.mrf.mxu1 }
 0x1b7   : > { %v1480_v0 = vpop.f32.mrf.mxu0  ;;  %v1544_v1 = vpop.f32.mrf.mxu1 }
 0x1b8   : > { %v1481_v3 = vadd.f32 %v1480_v0, %v1479_v18  ;;  %v1545_v4 = vadd.f32 %v1544_v1, %v1543_v19 }
 0x1b9   : > { %v1482_v5 = vpop.f32.mrf.mxu0  ;;  %v1546_v2 = vpop.f32.mrf.mxu1 }
 0x1ba   : > { %v1067_v6 = vadd.f32 %v1481_v3, %v2179_v63 }
 0x1bb   : > { %v1483_v7 = vpop.f32.mrf.mxu0  ;;  %v1547_v8 = vpop.f32.mrf.mxu1 }
 0x1bc   : > { %v2183_v9 = vadd.f32 %v1545_v4, %v1067_v6  ;;  %v1484_v10 = vadd.f32 %v1483_v7, %v1482_v5  ;;  %v1548_v11 = vadd.f32 %v1547_v8, %v1546_v2 }
 0x1bd   : > { %v1485_v12 = vpop.f32.mrf.mxu0  ;;  %v1549_v13 = vpop.f32.mrf.mxu1 }
 0x1be   : > { %v1070_v14 = vadd.f32 %v1484_v10, %v2179_v63 }
 0x1bf   : > { %v1486_v15 = vpop.f32.mrf.mxu0  ;;  %v1550_v16 = vpop.f32.mrf.mxu1 }
 0x1c0   : > { %v2186_v17 = vadd.f32 %v1548_v11, %v1070_v14  ;;  %v1487_v22 = vadd.f32 %v1486_v15, %v1485_v12  ;;  %v1551_v23 = vadd.f32 %v1550_v16, %v1549_v13 }
 0x1c1   : > { %v1488_v24 = vpop.f32.mrf.mxu0  ;;  %v1552_v25 = vpop.f32.mrf.mxu1 }
 0x1c2   : > { %v1075_v26 = vadd.f32 %v1487_v22, %v2179_v63 }
 0x1c3   : > { %v1489_v27 = vpop.f32.mrf.mxu0  ;;  %v1553_v28 = vpop.f32.mrf.mxu1 }
 0x1c4   : > { %v2189_v29 = vadd.f32 %v1551_v23, %v1075_v26  ;;  %v1490_v30 = vadd.f32 %v1489_v27, %v1488_v24  ;;  %v1554_v31 = vadd.f32 %v1553_v28, %v1552_v25 }
 0x1c5   : > { %v1491_v32 = vpop.f32.mrf.mxu0  ;;  %v1555_v33 = vpop.f32.mrf.mxu1 }
 0x1c6   : > { %v1078_v34 = vadd.f32 %v1490_v30, %v2179_v63 }
 0x1c7   : > { %v1492_v35 = vpop.f32.mrf.mxu0  ;;  %v1556_v36 = vpop.f32.mrf.mxu1 }
 0x1c8   : > { %v2192_v37 = vadd.f32 %v1554_v31, %v1078_v34  ;;  %v1493_v38 = vadd.f32 %v1492_v35, %v1491_v32  ;;  %v1557_v39 = vadd.f32 %v1556_v36, %v1555_v33 }
 0x1c9   : > { %v1494_v40 = vpop.f32.mrf.mxu0  ;;  %v1558_v41 = vpop.f32.mrf.mxu1 }
 0x1ca   : > { %v1083_v42 = vadd.f32 %v1493_v38, %v2179_v63 }
 0x1cb   : > { %v1495_v43 = vpop.f32.mrf.mxu0  ;;  %v1559_v44 = vpop.f32.mrf.mxu1 }
 0x1cc   : > { %v2195_v45 = vadd.f32 %v1557_v39, %v1083_v42  ;;  %v1496_v46 = vadd.f32 %v1495_v43, %v1494_v40  ;;  %v1560_v47 = vadd.f32 %v1559_v44, %v1558_v41 }
 0x1cd   : > { %v1497_v48 = vpop.f32.mrf.mxu0  ;;  %v1561_v49 = vpop.f32.mrf.mxu1 }
 0x1ce   : > { %v1086_v50 = vadd.f32 %v1496_v46, %v2179_v63 }
 0x1cf   : > { %v1498_v51 = vpop.f32.mrf.mxu0  ;;  %v1562_v52 = vpop.f32.mrf.mxu1 }
 0x1d0   : > { %v2198_v53 = vadd.f32 %v1560_v47, %v1086_v50  ;;  %v1499_v54 = vadd.f32 %v1498_v51, %v1497_v48  ;;  %v1563_v55 = vadd.f32 %v1562_v52, %v1561_v49 }
 0x1d1   : > { %v1500_v56 = vpop.f32.mrf.mxu0  ;;  %v1564_v57 = vpop.f32.mrf.mxu1 }
 0x1d2   : > { %v1091_v58 = vadd.f32 %v1499_v54, %v2179_v63 }
 0x1d3   : > { %v1501_v59 = vpop.f32.mrf.mxu0  ;;  %v1565_v60 = vpop.f32.mrf.mxu1 }
 0x1d4   : > { %v2201_v20 = vadd.f32 %v1563_v55, %v1091_v58  ;;  %v1502_v61 = vadd.f32 %v1501_v59, %v1500_v56  ;;  %v1566_v21 = vadd.f32 %v1565_v60, %v1564_v57 }
 0x1d5   : > { %v2203_v18 = vpop.f32.mrf.mxu0  ;;  %v2205_v19 = vpop.f32.mrf.mxu1 }
 0x1d6   : > { %v1094_v0 = vadd.f32 %v1502_v61, %v2179_v63 }
 0x1d7   : > { %v2208_v1 = vpop.f32.mrf.mxu0  ;;  %v2210_v3 = vpop.f32.mrf.mxu1 }
 0x1d8   : > { %v2212_v4 = vadd.f32 %v1566_v21, %v1094_v0 }
 0x1d9   : > { %v1506_v5 = vpop.f32.mrf.mxu0  ;;  %v2214_v2 = vpop.f32.mrf.mxu1 }
 0x1db   : > { %v1507_v6 = vpop.f32.mrf.mxu0  ;;  %v2216_v7 = vpop.f32.mrf.mxu1 }
 0x1dd   : > { %v1509_v8 = vpop.f32.mrf.mxu0  ;;  %v1573_v10 = vpop.f32.mrf.mxu1 }
 0x1df   : > { %v1510_v11 = vpop.f32.mrf.mxu0  ;;  %v1574_v12 = vpop.f32.mrf.mxu1 }
 0x1e0   : > { %v1511_v60 = vadd.f32 %v1510_v11, %v1509_v8  ;;  %v1505_v8 = vadd.f32 %v2208_v1, %v2203_v18 }
 0x1e1   : > { %v1512_v13 = vpop.f32.mrf.mxu0  ;;  %v1576_v14 = vpop.f32.mrf.mxu1 }
 0x1e3   : > { %v1513_v15 = vpop.f32.mrf.mxu0  ;;  %v1577_v16 = vpop.f32.mrf.mxu1 }
 0x1e4   : > { %v1514_v55 = vadd.f32 %v1513_v15, %v1512_v13  ;;  %v1107_v13 = vadd.f32 %v1511_v60, %v2179_v63 }
 0x1e5   : > { %v1515_v22 = vpop.f32.mrf.mxu0  ;;  %v1579_v23 = vpop.f32.mrf.mxu1 }
 0x1e6   : > { %v1110_v61 = vadd.f32 %v1514_v55, %v2179_v63 }
 0x1e7   : > { %v1516_v24 = vpop.f32.mrf.mxu0  ;;  %v1580_v25 = vpop.f32.mrf.mxu1 }
 0x1e8   : > { %v1517_v49 = vadd.f32 %v1516_v24, %v1515_v22  ;;  %v1581_v59 = vadd.f32 %v1580_v25, %v1579_v23  ;;  %v1578_v22 = vadd.f32 %v1577_v16, %v1576_v14  ;;  %v1508_v24 = vadd.f32 %v1507_v6, %v1506_v5 }
 0x1e9   : > { %v1518_v26 = vpop.f32.mrf.mxu0  ;;  %v1582_v27 = vpop.f32.mrf.mxu1  ;;  %v1572_v14 = vadd.f32 %v2216_v7, %v2214_v2  ;;  %v1099_v5 = vadd.f32 %v1505_v8, %v2179_v63  ;;  %v1233_v2 = vmax.f32 %v2212_v4, 0.0  ;;  %v1229_v4 = vmax.f32 %v2192_v37, 0.0  ;;  %v1242_v37 = vld [vmem:[%s2303_s5] sm:$0x1] }
 0x1ea   : > { %v1115_v56 = vadd.f32 %v1517_v49, %v2179_v63  ;;  %v1207_v15 = vadd.f32 %v1578_v22, %v1110_v61  ;;  %v1102_v11 = vadd.f32 %v1508_v24, %v2179_v63 }
 0x1eb   : > { %v1519_v28 = vpop.f32.mrf.mxu0  ;;  %v1583_v30 = vpop.f32.mrf.mxu1 }
 0x1ec   : > { %v1520_v42 = vadd.f32 %v1519_v28, %v1518_v26  ;;  %v1584_v54 = vadd.f32 %v1583_v30, %v1582_v27  ;;  %v1212_v21 = vadd.f32 %v1581_v59, %v1115_v56  ;;  %v1575_v27 = vadd.f32 %v1574_v12, %v1573_v10 }
 0x1ed   : > { %v1521_v31 = vpop.f32.mrf.mxu0  ;;  %v1585_v32 = vpop.f32.mrf.mxu1  ;;  %v1237_v25 = vmax.f32 %v1207_v15, 0.0  ;;  %v1199_v6 = vadd.f32 %v1572_v14, %v1102_v11  ;;  %v1569_v12 = vadd.f32 %v2210_v3, %v2205_v19  ;;  %v1231_v19 = vmax.f32 %v2198_v53, 0.0 }
 0x1ee   : > { %v1118_v50 = vadd.f32 %v1520_v42, %v2179_v63  ;;  %v1238_v26 = vmax.f32 %v1212_v21, 0.0  ;;  %v1204_v23 = vadd.f32 %v1575_v27, %v1107_v13  ;;  %v1230_v3 = vmax.f32 %v2195_v45, 0.0 }
 0x1ef   : > { %v1522_v33 = vpop.f32.mrf.mxu0  ;;  %v1586_v34 = vpop.f32.mrf.mxu1  ;;  %v1196_v18 = vadd.f32 %v1569_v12, %v1099_v5  ;;  %v1235_v1 = vmax.f32 %v1199_v6, 0.0  ;;  %v1227_v53 = vmax.f32 %v2186_v17, 0.0  ;;  %v1226_v45 = vmax.f32 %v2183_v9, 0.0 }
 0x1f0   : > { %v1523_v38 = vadd.f32 %v1522_v33, %v1521_v31  ;;  %v1587_v47 = vadd.f32 %v1586_v34, %v1585_v32  ;;  %v1215_v57 = vadd.f32 %v1584_v54, %v1118_v50  ;;  %v1236_v10 = vmax.f32 %v1204_v23, 0.0 }
 0x1f1   : > { %v1524_v35 = vpop.f32.mrf.mxu0  ;;  %v1588_v36 = vpop.f32.mrf.mxu1  ;;  %v1234_v16 = vmax.f32 %v1196_v18, 0.0 }
 0x1f2   : > { %v1123_v43 = vadd.f32 %v1523_v38, %v2179_v63  ;;  %v1239_v0 = vmax.f32 %v1215_v57, 0.0 }
 0x1f3   : > { %v1525_v39 = vpop.f32.mrf.mxu0  ;;  %v1589_v40 = vpop.f32.mrf.mxu1 }
 0x1f4   : > { %v1526_v41 = vadd.f32 %v1525_v39, %v1524_v35  ;;  %v1590_v46 = vadd.f32 %v1589_v40, %v1588_v36  ;;  %v1220_v51 = vadd.f32 %v1587_v47, %v1123_v43 }
 0x1f6   : > { %v1126_v44 = vadd.f32 %v1526_v41, %v2179_v63  ;;  %v1240_v58 = vmax.f32 %v1220_v51, 0.0  ;;  %v1232_v63 = vmax.f32 %v2201_v20, 0.0  ;;  %v1228_v20 = vmax.f32 %v2189_v29, 0.0 }
 0x1f7   : > { %v1244_v29 = vstv %s1243_s22 }
 0x1f8   : > { %v1223_v48 = vadd.f32 %v1590_v46, %v1126_v44 }
 0x1fa   : > { %v1241_v52 = vmax.f32 %v1223_v48, 0.0 }
 0x1fc   : > { %1609 = vmatpush3.xpose.msra.mxu0 %v1241_v52 }
 0x1fd   : > { %1610 = vmatprep.subr.mxu0 %v1808_v62 }
 0x200   : > { %1611 = vmatpush3.xpose.msra.mxu0 %v1240_v58 }
 0x201   : > { %1612 = vmatprep.subr.mxu0 %v1808_v62 }
 0x204   : > { %1613 = vmatpush3.xpose.msra.mxu0 %v1239_v0 }
 0x205   : > { %1614 = vmatprep.subr.mxu0 %v1808_v62 }
 0x208   : > { %1615 = vmatpush3.xpose.msra.mxu0 %v1238_v26 }
 0x209   : > { %1616 = vmatprep.subr.mxu0 %v1808_v62 }
 0x20c   : > { %1617 = vmatpush3.xpose.msra.mxu0 %v1237_v25 }
 0x20d   : > { %1618 = vmatprep.subr.mxu0 %v1808_v62 }
 0x210   : > { %1619 = vmatpush3.xpose.msra.mxu0 %v1236_v10 }
 0x211   : > { %1620 = vmatprep.subr.mxu0 %v1808_v62 }
 0x214   : > { %1621 = vmatpush3.xpose.msra.mxu0 %v1235_v1 }
 0x215   : > { %1622 = vmatprep.subr.mxu0 %v1808_v62 }
 0x218   : > { %1623 = vmatpush3.xpose.msra.mxu0 %v1234_v16 }
 0x219   : > { %1624 = vmatprep.subr.mxu0 %v1808_v62 }
 0x21c   : > { %1625 = vmatpush3.xpose.msra.mxu0 %v1233_v2 }
 0x21d   : > { %1626 = vmatprep.subr.mxu0 %v1808_v62 }
 0x220   : > { %1627 = vmatpush3.xpose.msra.mxu0 %v1232_v63 }
 0x221   : > { %1628 = vmatprep.subr.mxu0 %v1808_v62 }
 0x224   : > { %1629 = vmatpush3.xpose.msra.mxu0 %v1231_v19 }
 0x225   : > { %1630 = vmatprep.subr.mxu0 %v1808_v62 }
 0x228   : > { %1631 = vmatpush3.xpose.msra.mxu0 %v1230_v3 }
 0x229   : > { %1632 = vmatprep.subr.mxu0 %v1808_v62 }
 0x22c   : > { %1633 = vmatpush3.xpose.msra.mxu0 %v1229_v4 }
 0x22d   : > { %1634 = vmatprep.subr.mxu0 %v1808_v62 }
 0x230   : > { %1635 = vmatpush3.xpose.msra.mxu0 %v1228_v20 }
 0x231   : > { %1636 = vmatprep.subr.mxu0 %v1808_v62 }
 0x234   : > { %1637 = vmatpush3.xpose.msra.mxu0 %v1227_v53 }
 0x235   : > { %1638 = vmatprep.subr.mxu0 %v1808_v62 }
 0x238   : > { %1639 = vmatpush3.xpose.msra.mxu0 %v1226_v45 }
 0x23b   : > { %1641 = vmatmul.mubr.f32.vlgmr.msra.gmra.mxu0 %v1242_v37 }
 0x2fb   : > { %v1311_v7 = vpop.f32.mrf.mxu0 }
 0x2fc   : > { %v1312_v28 = vadd.f32 %v1311_v7, %v1244_v29 }
 0x2fd   : > { %v1642_v30 = vpop.f32.mrf.mxu0 }
 0x2fe   : > { %v1315_v31 = vsub.f32 0.0, %v1312_v28 }
 0x300   : > { %v1316_v17 = vmul.f32 1.442695, %v1315_v31 }
 0x302   : > { %1741 = vpow2.f32 %v1316_v17 }
 0x30f   : > { %v1742_v62 = vpop.eup %1741 }
 0x310   : > { %v1318_v32 = vadd.f32 1.0, %v1742_v62 }
 0x312   : > { %1743 = vrcp.f32 %v1318_v32 }
 0x31f   : > { %v1744_v9 = vpop.eup %1743 }
 0x320   : > { %1320 = vst [vmem:[%s272_s23] sm:$0x1] %v1744_v9 }
 0x321   : > { %1758 = shalt.err (!%p1755_p3)
}
 0x322   : > { %s1759_s16 = scalar_lea.hbm %s2263_s30, 16  ;;  %s1763_s21 = scalar_lea.hbm %s2305_s7, 32 }
 0x323   : > { %p1760_p4 = scmp.ne.s32.totalorder %s2263_s30, %s1759_s16  ;;  %p1764_p9 = scmp.lt.s32.totalorder %s2263_s30, %s2305_s7 }
 0x324   : > { %p1765_p10 = scmp.lt.s32.totalorder %s1763_s21, %s1759_s16 }
 0x325   : > { %p1761_p7 = pnand %p1760_p4, %p1889_p5 }
 0x326   : > { %p1766_p11 = por %p1765_p10, %p1764_p9 }
 0x327   : > { %p1762_p8 = pneg %p1761_p7 }
 0x329   : > { %p1767_p12 = pnand %p1766_p11, %p1762_p8 }
 0x32b   : > { %1770 = shalt.err (!%p1767_p12)
}
 0x32c   : > { %1643 = dma.vmem_to_hbm [thread:$0]  (%p1889_p5), %s1335_s17, 16, %s2263_s30, %s1322_s9  }
 0x32d PF: > { %p1649_p13 = scmp.ge.s32.totalorder %s1805_s29, 2  ;;  %s1346_s23 = sand.u32 1, %s1793_s26  }
 0x32e   : > { %s1347_s24 = scalar_lea.sflag [#allocation4], %s1346_s23 }
 0x32f   : > { %p1646_p0 = pnand %p1649_p13, %p1893_p6 }
 0x331   : > { %p1647_p1 = pneg %p1646_p0 }
 0x333   : > { %1788 = dma.done.wait (%p1647_p1), %s1347_s24, 16  }
 0x334   : > { %1790 = vsyncadd (%p1647_p1), %s1347_s24, 4294967280  ;;  %p18_p2 = scmp.ge.s32.totalorder %s1877_s8, 4   ;;  %s2308_s26 = smov %s1797_s27 }
 0x335   : > { %s2309_s27 = smov %s1801_s28  ;;  %s2310_s28 = smov %s1887_s11 }
 0x336   : > { %s2311_s29 = smov %s1877_s8  ;;  %20 = sbr.rel (!%p18_p2) target bundleno = 5 (0x5), region = 83 }
 0x33b   :  { %1351 = vsyncpa [#allocation4], 1 }
 0x33c   :  { %1353 = vsyncpa [#allocation4 + $0x1], 1 }

</bundles_post_ra>
